<compile_context>
chip_gen: v7x
topology: tpu7x:2x2x1
jax: 0.10.0
libtpu: 0.0.40
codegen_flags: <defaults>
</compile_context>

<pallas_src>
import jax
import jax.numpy as jnp
from jax.experimental import pallas as pl
from jax.experimental.pallas import tpu as pltpu


def _posenet_l1_kernel(nrows_ref, w_ref, pred_ref, targ_ref, out_ref):
    """Accumulate sum(weight * |pred - targ|) over this core's row blocks."""
    c = pl.program_id(0)   # core (parallel axis)
    t = pl.program_id(1)   # row-block step (reduction axis)

    @pl.when(t == 0)
    def _init():
        out_ref[...] = jnp.zeros_like(out_ref)

    diff = jnp.abs(pred_ref[...].astype(jnp.float32)
                   - targ_ref[...].astype(jnp.float32))

    # Mask rows past the end of the data (partial last block / clamped steps).
    tile_r = diff.shape[0]
    base_row = (c * pl.num_programs(1) + t) * tile_r
    row = base_row + jax.lax.broadcasted_iota(jnp.int32, diff.shape, 0)
    wd = jnp.where(row < nrows_ref[0, 0], diff * w_ref[...], 0.0)

    # Sublane reduction to (1, 128); the final cross-lane reduce happens on the
    # tiny (num_cores, 1, 128) output in the wrapper.
    out_ref[...] += jnp.sum(wd, axis=0, keepdims=True).reshape(out_ref.shape)


def posenet_criterion(pred, targ, sax, saq, *, tile_rows=4480, num_cores=2):
    """pred, targ: (N, 7); sax, saq: scalar f32 params. Returns scalar loss."""
    n, d = pred.shape
    assert d == 7, "PoseNetCriterion expects N x 7 pose tensors"
    assert targ.shape == pred.shape
    assert tile_rows > 0 and tile_rows % 56 == 0, \
        "tile_rows must be a multiple of 56 (8 sublanes x pose width 7)"

    sax = jnp.asarray(sax, jnp.float32)
    saq = jnp.asarray(saq, jnp.float32)
    # Per-element weights of the two mean-L1 terms (runtime data, not baked).
    w_t = jnp.exp(-sax) / (3.0 * n)
    w_q = jnp.exp(-saq) / (4.0 * n)

    total = n * d
    rows = total // 128
    rem = total - rows * 128

    # Flat contiguous view: no transpose, no pad.
    pred_flat = pred.reshape(total)
    targ_flat = targ.reshape(total)

    loss = sax + saq

    if rows > 0:
        main_pred = pred_flat[: rows * 128].reshape(rows, 128)
        main_targ = targ_flat[: rows * 128].reshape(rows, 128)

        if rows <= tile_rows:
            tile_r = rows          # single block == full array (any row count)
            nblocks = 1
        else:
            tile_r = tile_rows     # multiple of 56 -> same weight pattern per block
            nblocks = pl.cdiv(rows, tile_r)
        t_per_core = pl.cdiv(nblocks, num_cores)

        # Resident per-block weights: flat index f = r*128 + l; translation iff
        # (f mod 7) < 3. Every block starts at a flat index == 0 (mod 7), so one
        # block-sized pattern is exact for all blocks.
        flat_idx = jnp.arange(tile_r * 128, dtype=jnp.int32).reshape(tile_r, 128)
        w_block = jnp.where(flat_idx % 7 < 3, w_t, w_q).astype(jnp.float32)

        nrows = jnp.full((1, 1), rows, dtype=jnp.int32)

        def data_map(c, t):
            # Clamp so trailing (core, step) slots past the last real block just
            # re-read a valid block; their rows are masked out in-kernel.
            return (jnp.minimum(c * t_per_core + t, nblocks - 1), 0)

        block_bytes = tile_r * 128 * 4
        # 3 tensors x 2 pipeline buffers + slack, capped for v7x (64 MiB VMEM).
        vmem_limit = min(max(6 * block_bytes + (4 << 20), 16 << 20), 64 << 20)

        partial = pl.pallas_call(
            _posenet_l1_kernel,
            out_shape=jax.ShapeDtypeStruct((num_cores, 1, 128), jnp.float32),
            grid_spec=pltpu.PrefetchScalarGridSpec(
                num_scalar_prefetch=0,
                grid=(num_cores, t_per_core),
                in_specs=[
                    pl.BlockSpec(memory_space=pltpu.SMEM),             # nrows
                    pl.BlockSpec((tile_r, 128), lambda c, t: (0, 0)),  # weights (resident)
                    pl.BlockSpec((tile_r, 128), data_map),             # pred rows
                    pl.BlockSpec((tile_r, 128), data_map),             # targ rows
                ],
                out_specs=pl.BlockSpec((1, 1, 128), lambda c, t: (c, 0, 0)),
            ),
            compiler_params=pltpu.CompilerParams(
                dimension_semantics=("parallel", "arbitrary"),
                vmem_limit_bytes=int(vmem_limit),
            ),
        )(nrows, w_block, main_pred, main_targ)

        loss = loss + jnp.sum(partial)

    if rem > 0:
        # <128-element ragged tail: negligible, handled in plain JAX.
        tail_idx = jnp.arange(rows * 128, total, dtype=jnp.int32)
        w_tail = jnp.where(tail_idx % 7 < 3, w_t, w_q)
        tail_diff = jnp.abs(pred_flat[rows * 128:].astype(jnp.float32)
                            - targ_flat[rows * 128:].astype(jnp.float32))
        loss = loss + jnp.sum(w_tail * tail_diff)

    return loss


def posenet_criterion_ref(pred, targ, sax, saq):
    # Pure-JAX reference of the PyTorch forward.
    t_loss = jnp.mean(jnp.abs(pred[:, :3] - targ[:, :3]))
    q_loss = jnp.mean(jnp.abs(pred[:, 3:] - targ[:, 3:]))
    return jnp.exp(-sax) * t_loss + sax + jnp.exp(-saq) * q_loss + saq


if __name__ == "__main__":
    key = jax.random.PRNGKey(0)
    k1, k2, k3, k4 = jax.random.split(key, 4)

    # Module __init__ defaults: sax=0.0, saq=0.0.
    sax = jnp.float32(0.0)
    saq = jnp.float32(0.0)

    # Small batch: single row-block plus ragged-tail epilogue.
    n1 = 64
    pred1 = jax.random.normal(k1, (n1, 7), dtype=jnp.float32)
    targ1 = jax.random.normal(k2, (n1, 7), dtype=jnp.float32)
    loss1 = posenet_criterion(pred1, targ1, sax, saq)
    jax.block_until_ready(loss1)
    ref1 = posenet_criterion_ref(pred1, targ1, sax, saq)
    assert jnp.allclose(loss1, ref1, rtol=1e-5, atol=1e-5), (loss1, ref1)

    # Larger batch with a small tile to exercise the multi-block accumulating
    # grid, the per-core split, block-index clamping and row masking.
    n2 = 3000
    pred2 = jax.random.normal(k3, (n2, 7), dtype=jnp.float32)
    targ2 = jax.random.normal(k4, (n2, 7), dtype=jnp.float32)
    loss2 = posenet_criterion(pred2, targ2, sax, saq, tile_rows=56)
    jax.block_until_ready(loss2)
    ref2 = posenet_criterion_ref(pred2, targ2, sax, saq)
    assert jnp.allclose(loss2, ref2, rtol=1e-5, atol=1e-5), (loss2, ref2)

    # Non-zero learned weights exercise the exp(-sax)/exp(-saq) scaling.
    sax3 = jnp.float32(0.5)
    saq3 = jnp.float32(-2.0)
    loss3 = posenet_criterion(pred2, targ2, sax3, saq3)
    jax.block_until_ready(loss3)
    ref3 = posenet_criterion_ref(pred2, targ2, sax3, saq3)
    assert jnp.allclose(loss3, ref3, rtol=1e-5, atol=1e-5), (loss3, ref3)

    print("KERNEL_OK")
</pallas_src>

<mosaic_0001>
module attributes {stable_mosaic.version = 11 : i64} {
  func.func @_posenet_l1_kernel(%arg0: i32, %arg1: i32, %arg2: memref<1x1xi32, #tpu.memory_space<smem>>, %arg3: memref<3x128xf32, #tpu.memory_space<vmem>>, %arg4: memref<3x128xf32, #tpu.memory_space<vmem>>, %arg5: memref<3x128xf32, #tpu.memory_space<vmem>>, %arg6: memref<1x1x128xf32, #tpu.memory_space<vmem>>) attributes {dimension_semantics = [#tpu.dimension_semantics<parallel>, #tpu.dimension_semantics<arbitrary>], iteration_bounds = array<i64: 2, 1>, scalar_prefetch = 0 : i64, scratch_operands = 0 : i64, tpu.core_type = #tpu.core_type<tc>, window_params = [{transform_indices = @transform_0, window_bounds = array<i64: 1, 1>}, {pipeline_mode = #tpu.pipeline_mode<synchronous>, transform_indices = @transform_1, window_bounds = array<i64: 3, 128>}, {transform_indices = @transform_2, window_bounds = array<i64: 3, 128>}, {transform_indices = @transform_3, window_bounds = array<i64: 3, 128>}, {transform_indices = @transform_4, window_bounds = array<i64: 1, 1, 128>}]} {
    %c0_i32 = arith.constant 0 : i32
    %0 = arith.cmpi eq, %arg1, %c0_i32 : i32
    %1 = arith.extui %0 : i1 to i32
    %c0_i32_0 = arith.constant 0 : i32
    %2 = arith.cmpi ne, %1, %c0_i32_0 : i32
    scf.if %2 {
      %cst_15 = arith.constant 0.000000e+00 : f32
      %26 = vector.broadcast %cst_15 : f32 to vector<1x1x128xf32>
      %c0_16 = arith.constant 0 : index
      %c0_17 = arith.constant 0 : index
      %c0_18 = arith.constant 0 : index
      %27 = vector.load %arg6[%c0_16, %c0_17, %c0_18] : memref<1x1x128xf32, #tpu.memory_space<vmem>>, vector<1x1x128xf32>
      tpu.vector_store %arg6[%c0_16, %c0_17, %c0_18], %26 {strides = array<i32>} : memref<1x1x128xf32, #tpu.memory_space<vmem>>, vector<1x1x128xf32>,
    } else {
    }
    %c0 = arith.constant 0 : index
    %c0_1 = arith.constant 0 : index
    %3 = vector.load %arg4[%c0, %c0_1] : memref<3x128xf32, #tpu.memory_space<vmem>>, vector<3x128xf32>
    %c0_2 = arith.constant 0 : index
    %c0_3 = arith.constant 0 : index
    %4 = vector.load %arg5[%c0_2, %c0_3] : memref<3x128xf32, #tpu.memory_space<vmem>>, vector<3x128xf32>
    %5 = arith.subf %3, %4 : vector<3x128xf32>
    %6 = math.absf %5 : vector<3x128xf32>
    %c1_i32 = arith.constant 1 : i32
    %7 = arith.muli %arg0, %c1_i32 : i32
    %8 = arith.addi %7, %arg1 : i32
    %c3_i32 = arith.constant 3 : i32
    %9 = arith.muli %8, %c3_i32 : i32
    %10 = tpu.iota {dimensions = array<i32: 0>} : vector<3x128xi32>
    %11 = vector.broadcast %9 : i32 to vector<3x128xi32>
    %12 = arith.addi %11, %10 : vector<3x128xi32>
    %c0_4 = arith.constant 0 : index
    %c0_5 = arith.constant 0 : index
    %13 = memref.load %arg2[%c0_4, %c0_5] : memref<1x1xi32, #tpu.memory_space<smem>>
    %14 = vector.broadcast %13 : i32 to vector<3x128xi32>
    %15 = arith.cmpi slt, %12, %14 : vector<3x128xi32>
    %c0_6 = arith.constant 0 : index
    %c0_7 = arith.constant 0 : index
    %16 = vector.load %arg3[%c0_6, %c0_7] : memref<3x128xf32, #tpu.memory_space<vmem>>, vector<3x128xf32>
    %17 = arith.mulf %6, %16 : vector<3x128xf32>
    %cst = arith.constant 0.000000e+00 : f32
    %18 = vector.broadcast %cst : f32 to vector<3x128xf32>
    %19 = arith.select %15, %17, %18 : vector<3x128xi1>, vector<3x128xf32>
    %c0_8 = arith.constant 0 : index
    %c0_9 = arith.constant 0 : index
    %c0_10 = arith.constant 0 : index
    %20 = vector.load %arg6[%c0_8, %c0_9, %c0_10] : memref<1x1x128xf32, #tpu.memory_space<vmem>>, vector<1x1x128xf32>
    %cst_11 = arith.constant dense<0.000000e+00> : vector<128xf32>
    %21 = vector.multi_reduction <add>, %19, %cst_11 [0] : vector<3x128xf32> to vector<128xf32>
    %22 = vector.shape_cast %21 : vector<128xf32> to vector<1x128xf32>
    %23 = vector.shape_cast %22 : vector<1x128xf32> to vector<1x1x128xf32>
    %24 = arith.addf %20, %23 : vector<1x1x128xf32>
    %c0_12 = arith.constant 0 : index
    %c0_13 = arith.constant 0 : index
    %c0_14 = arith.constant 0 : index
    %25 = vector.load %arg6[%c0_12, %c0_13, %c0_14] : memref<1x1x128xf32, #tpu.memory_space<vmem>>, vector<1x1x128xf32>
    tpu.vector_store %arg6[%c0_12, %c0_13, %c0_14], %24 {strides = array<i32>} : memref<1x1x128xf32, #tpu.memory_space<vmem>>, vector<1x1x128xf32>,
    return
  }
  func.func @transform_0(%arg0: i32, %arg1: i32) -> (i32, i32) {
    %c0_i32 = arith.constant 0 : i32
    %c0_i32_0 = arith.constant 0 : i32
    %c0_i32_1 = arith.constant 0 : i32
    return %c0_i32, %c0_i32_0 : i32, i32
  }
  func.func @transform_1(%arg0: i32, %arg1: i32) -> (i32, i32) {
    %c0_i32 = arith.constant 0 : i32
    %c0_i32_0 = arith.constant 0 : i32
    %c0_i32_1 = arith.constant 0 : i32
    return %c0_i32, %c0_i32_0 : i32, i32
  }
  func.func @transform_2(%arg0: i32, %arg1: i32) -> (i32, i32) {
    %c1_i32 = arith.constant 1 : i32
    %0 = arith.muli %arg0, %c1_i32 : i32
    %1 = arith.addi %0, %arg1 : i32
    %c0_i32 = arith.constant 0 : i32
    %2 = arith.minsi %1, %c0_i32 : i32
    %c0_i32_0 = arith.constant 0 : i32
    %c0_i32_1 = arith.constant 0 : i32
    return %2, %c0_i32_0 : i32, i32
  }
  func.func @transform_3(%arg0: i32, %arg1: i32) -> (i32, i32) {
    %c1_i32 = arith.constant 1 : i32
    %0 = arith.muli %arg0, %c1_i32 : i32
    %1 = arith.addi %0, %arg1 : i32
    %c0_i32 = arith.constant 0 : i32
    %2 = arith.minsi %1, %c0_i32 : i32
    %c0_i32_0 = arith.constant 0 : i32
    %c0_i32_1 = arith.constant 0 : i32
    return %2, %c0_i32_0 : i32, i32
  }
  func.func @transform_4(%arg0: i32, %arg1: i32) -> (i32, i32, i32) {
    %c0_i32 = arith.constant 0 : i32
    %c0_i32_0 = arith.constant 0 : i32
    %c0_i32_1 = arith.constant 0 : i32
    return %arg0, %c0_i32, %c0_i32_0 : i32, i32, i32
  }
}

</mosaic_0001>

<bundles_post_ra>
// kernel: tpu_custom_call.1
= control target key start
LH: loop header
LB: loop body
LE: loop exit
PB: predicated region body
PF: predicated region fallthrough
CT: control target
= control target key end

     0   :  { %s801_s0 = inlined_call_operand.<no memory space> [shape: s32[1,1], index: 0, kind: input, shape index: {}]   ;;  %s802_s1 = inlined_call_operand.hbm [shape: f32[3,128], index: 1, kind: input, shape index: {}]   ;;  %s803_s2 = inlined_call_operand.vmem [shape: f32[3,128], index: 2, kind: input, shape index: {}]   ;;  %s804_s3 = inlined_call_operand.vmem [shape: f32[3,128], index: 3, kind: input, shape index: {}]   ;;  %s805_s4 = inlined_call_operand.hbm [shape: f32[2,1,128], index: 4, kind: output, shape index: {}]  }
   0x1   :  { %9 = sst [smem:[#allocation2]] %s801_s0 }
   0x2   :  { %10 = vsyncpa [#allocation4], 0 }
   0x3   :  { %11 = vsyncpa [#allocation5], 0 }
   0x4   :  { %13 = vsyncpa [#allocation5 + $0x1], 0  ;;  %s637_s17 = smov 0   ;;  %s639_s18 = smov 0  }
   0x5   :  { %s641_s19 = smov 0   ;;  %s643_s20 = smov 0  }
   0x6   :  { %s645_s21 = smov 0   ;;  %s647_s22 = smov 0  }
   0x7 LB: > { %s409_s0 = sadd.s32 4294967295, %s604_s22   ;;  %s410_s23 = sadd.s32 4294967294, %s604_s22   ;;  %s604_s22 = sphi %s647_s22, %s19_s22   ;;  %s600_s21 = sphi %s645_s21, %s823_s21   ;;  %s596_s20 = sphi %s643_s20, %s822_s20   ;;  %s592_s19 = sphi %s641_s19, %s821_s19   ;;  %s588_s18 = sphi %s639_s18, %s820_s18   ;;  %s584_s17 = sphi %s637_s17, %s819_s17  }
   0x8   : > { %s31_s24 = sadd.s32 1, %s600_s21  ;;  %s144_s25 = sadd.s32 1, %s592_s19 }
   0x9   : > { %p33_p0 = scmp.ge.s32.totalorder %s31_s24, 2  ;;  %p154_p1 = scmp.ne.s32.totalorder %s592_s19, %s588_s18 }
   0xa   : > { %p155_p2 = scmp.eq.s32.totalorder %s409_s0, 1  ;;  %p160_p3 = scmp.ne.s32.totalorder %s588_s18, %s584_s17 }
   0xb   : > { %s825_s24 = smov (%p33_p0, %s31_s24), 0  ;;  %p161_p5 = scmp.eq.s32.totalorder %s410_s23, 1 }
   0xc   : > { %p677_p4 = por %p155_p2, %p154_p1  ;;  %s141_s27 = ssub.s32 %s600_s21, %s825_s24 }
   0xd   : > { %p411_p6 = scmp.ge.s32.totalorder %s604_s22, 1  ;;  %p142_p7 = scmp.eq.s32.totalorder %s141_s27, 0 }
   0xe   : > { %s810_s26 = scalar_select %p677_p4, 1, 0 }
   0xf   : > { %p684_p8 = por %p161_p5, %p160_p3  ;;  %p168_p9 = scmp.lt.s32.totalorder %s604_s22, 3 }
  0x10   : > { %s690_s29 = scalar_select %p142_p7, %s592_s19, %s144_s25  }
  0x11   : > { %s811_s28 = scalar_select %p684_p8, 1, 0 }
  0x12   : > { %p692_p10 = pnand %p411_p6, %p168_p9  ;;  %p696_p11 = scmp.eq.s32.totalorder %s409_s0, 0 }
  0x13   : > { %s606_s6 = smov [#allocation3]   ;;  %s494_s11 = scalar_lea.hbm %s802_s1, 64 }
  0x14   : > { %s812_s30 = scalar_select %p692_p10, 1, 0 }
  0x15   : > { %s813_s5 = scalar_select %p696_p11, 1, 0 }
  0x16   : > { %p433_p12 = pneg %p692_p10  ;;  %s184_s7 = sshll.u32 %s606_s6, 4  ;;  %s185_s7 = int_to_ptr.vmem [resolvable:$true] %s184_s7 }
  0x17   : > { %p495_p0 = scmp.ne.s32.totalorder %s802_s1, %s494_s11  ;;  %p501_p5 = scmp.lt.u32.totalorder %s494_s11, %s802_s1 }
  0x18   : > { %p704_p13 = pnand %p696_p11, %p433_p12 }
  0x1a   : > { %p496_p1 = pneg %p704_p13 }
  0x1c   : > { %p497_p2 = pnand %p496_p1, %p495_p0 }
  0x1e   : > { %p498_p3 = pneg %p497_p2 }
  0x20   : > { %p503_p6 = pnand %p501_p5, %p498_p3 }
  0x22   : > { %506 = shalt.err (!%p503_p6)
}
  0x23   : > { %s507_s16 = scalar_lea.vmem %s185_s7, 64  ;;  %p515_p8 = scmp.lt.s32.totalorder %s185_s7, %s185_s7 }
  0x24   : > { %p508_p7 = scmp.ne.s32.totalorder %s185_s7, %s507_s16  ;;  %p516_p4 = scmp.lt.s32.totalorder %s507_s16, %s507_s16 }
  0x26   : > { %p510_p9 = pnand %p508_p7, %p496_p1  ;;  %p517_p11 = por %p516_p4, %p515_p8 }
  0x28   : > { %p511_p12 = pneg %p510_p9 }
  0x2a   : > { %p518_p10 = pnand %p517_p11, %p511_p12 }
  0x2c   : > { %521 = shalt.err (!%p518_p10)
}
  0x2d   : > { %436 = dma.hbm_to_vmem [thread:$0]  (!%p704_p13), %s802_s1, 64, %s185_s7, [#allocation4]  }
  0x2e   : > { %p815_p0 = scmp.ne.s32.totalorder %s812_s30, 0 }
  0x2f   : > { %p816_p2 = scmp.ne.s32.totalorder (!%p815_p0), %s813_s5, 0 }
  0x30   : > { %223 = sbr.rel (%p815_p0) target bundleno = 102 (0x66), region = 36 }
  0x37   : > { %575 = dma.done.wait (%p816_p2), [#allocation4], 64  }
  0x38   : > { %577 = vsyncadd (%p816_p2), [#allocation4], 4294967232  ;;  %s255_s25 = sand.u32 1, %s588_s18   ;;  %p258_p4 = scmp.lt.s32.totalorder %s596_s20, 0  ;;  %v288_v0 = vlaneseq  ;;  %v607_v1 = vmov 0.0   ;;  %vm299_vm1 = vcmask 1042432  }
  0x39   : > { %s292_s27 = sld [smem:[#allocation2]]  ;;  %s734_s6 = scalar_lea.vmem [#allocation6], %s255_s25  ;;  %v295_v9 = vld [vmem:[#allocation3] sm:$0x7] }
  0x3a   : > { %281 = vst [vmem:[%s734_s6] sm:$0x1] %v607_v1  ;;  %s287_s30 = smul.u32 3, %s596_s20  ;;  %v289_v2 = vshrl.u32 %v288_v0, 7  ;;  %s424_s14 = sshll.u32 %s596_s20, 4 }
  0x3b   : > { %s259_s7 = scalar_select %p258_p4, %s596_s20, 0 }
  0x3c   : > { %v290_v3 = vstv %s287_s30  ;;  %s322_s15 = sshll.u32 %s734_s6, 4  ;;  %s751_s23 = scalar_lea.hbm %s805_s4, %s424_s14  ;;  %s753_s15 = int_to_ptr.vmem [resolvable:$true] %s322_s15 }
  0x3d   : > { %s827_s7 = smov (!%p258_p4, %s259_s7), 0  ;;  %v291_v6 = vadd.s32 %v290_v3, %v289_v2  ;;  %s522_s30 = scalar_lea.vmem %s753_s15, 16 }
  0x3e   : > { %s419_s5 = sshll.u32 %s827_s7, 2  ;;  %p523_p8 = scmp.ne.s32.totalorder %s753_s15, %s522_s30 }
  0x3f   : > { %s263_s10 = scalar_lea.vmem %s803_s2, %s419_s5  ;;  %s273_s13 = scalar_lea.vmem %s804_s3, %s419_s5  ;;  %v293_v8 = vstv %s292_s27 }
  0x40   : > { %v282_v4 = vld [vmem:[%s263_s10] sm:$0x7]  ;;  %vm294_vm0 = vcmp.lt.s32.totalorder %v291_v6, %v293_v8  ;;  %s310_s27 = scalar_lea.sflag [#allocation5], %s255_s25  ;;  %p817_p10 = scmp.ne.s32.totalorder %s810_s26, 0 }
  0x41   : > { %v283_v5 = vld [vmem:[%s273_s13] sm:$0x7]  ;;  %s608_s20 = smov [#allocation6]  }
  0x42   : > { %v284_v7 = vsub.f32 %v282_v4, %v283_v5  ;;  %v298_v19 = vld [vmem:[%s734_s6] sm:$0x1]  ;;  %p524_p11 = pnand %p523_p8, %p817_p10  ;;  %s526_s7 = sshll.u32 %s608_s20, 4  ;;  %s527_s7 = int_to_ptr.vmem [resolvable:$false] %s526_s7 }
  0x43   : > { %s528_s5 = scalar_lea.vmem %s527_s7, 32  ;;  %p529_p1 = scmp.lt.s32.totalorder %s753_s15, %s527_s7 }
  0x44   : > { %v285_v10 = vand.u32 2147483647, %v284_v7  ;;  %p525_p13 = pneg %p524_p11  ;;  %p530_p3 = scmp.lt.s32.totalorder %s528_s5, %s522_s30 }
  0x46   : > { %v296_v11 = vmul.f32 %v295_v9, %v285_v10  ;;  %p531_p5 = por %p530_p3, %p529_p1 }
  0x48   : > { %v297_v12 = vsel %vm294_vm0, %v296_v11, 0.0  ;;  %p532_p6 = pnand %p531_p5, %p525_p13 }
  0x49   : > { %v300_v13 = vsel %vm299_vm1, %v297_v12, 0.0 }
  0x4a   : > { %v301_v14 = vrot.slane %v300_v13, 4 }
  0x4c   : > { %v302_v15 = vadd.f32 %v301_v14, %v300_v13 }
  0x4e   : > { %v303_v16 = vrot.slane %v302_v15, 2 }
  0x50   : > { %v304_v17 = vadd.f32 %v303_v16, %v302_v15 }
  0x52   : > { %v305_v18 = vrot.slane %v304_v17, 1 }
  0x54   : > { %v306_v20 = vadd.f32 %v305_v18, %v304_v17 }
  0x56   : > { %v307_v21 = vadd.f32 %v306_v20, %v298_v19 }
  0x58   : > { %308 = vst [vmem:[%s734_s6] sm:$0x1] %v307_v21 }
  0x59   : > { %535 = shalt.err (!%p532_p6)
}
  0x5a   : > { %s536_s25 = scalar_lea.hbm %s751_s23, 16  ;;  %s540_s9 = scalar_lea.hbm %s805_s4, 32 }
  0x5b   : > { %p537_p7 = scmp.ne.s32.totalorder %s751_s23, %s536_s25  ;;  %p541_p0 = scmp.lt.u32.totalorder %s751_s23, %s805_s4 }
  0x5c   : > { %p542_p2 = scmp.lt.u32.totalorder %s540_s9, %s536_s25  ;;  %p544_p8 = scmp.lt.u32.totalorder %s536_s25, %s751_s23 }
  0x5d   : > { %p538_p9 = pnand %p537_p7, %p817_p10 }
  0x5e   : > { %p543_p4 = por %p542_p2, %p541_p0 }
  0x5f   : > { %p539_p12 = pneg %p538_p9 }
  0x60   : > { %p545_p11 = por %p544_p8, %p543_p4 }
  0x62   : > { %p546_p13 = pnand %p545_p11, %p539_p12 }
  0x64   : > { %549 = shalt.err (!%p546_p13)
}
  0x65   : > { %431 = dma.vmem_to_hbm [thread:$0]  (%p817_p10), %s753_s15, 16, %s751_s23, %s310_s27  }
  0x66 PF: > { %p443_p1 = scmp.ge.s32.totalorder %s604_s22, 2  ;;  %s334_s12 = sand.u32 1, %s584_s17  }
  0x67   : > { %p818_p3 = scmp.ne.s32.totalorder %s811_s28, 0  ;;  %s335_s13 = scalar_lea.sflag [#allocation5], %s334_s12 }
  0x69   : > { %p438_p5 = pnand %p443_p1, %p818_p3 }
  0x6b   : > { %579 = dma.done.wait (!%p438_p5), %s335_s13, 16  }
  0x6c   : > { %581 = vsyncadd (!%p438_p5), %s335_s13, 4294967280  ;;  %s19_s22 = sadd.s32 1, %s604_s22   ;;  %s819_s17 = smov %s588_s18 }
  0x6d   : > { %p16_p6 = scmp.ge.s32.totalorder %s19_s22, 4   ;;  %s820_s18 = smov %s592_s19 }
  0x6e   : > { %s821_s19 = smov %s690_s29  ;;  %s822_s20 = smov %s600_s21 }
  0x6f   : > { %s823_s21 = smov %s825_s24  ;;  %18 = sbr.rel (!%p16_p6) target bundleno = 7 (0x7), region = 83 }
  0x76   :  { %339 = vsyncpa [#allocation4], 1 }
  0x77   :  { %341 = vsyncpa [#allocation4 + $0x1], 1 }
  0x78   :  { %342 = vsyncpa [#allocation5], 1 }
  0x79   :  { %344 = vsyncpa [#allocation5 + $0x1], 1 }

</bundles_post_ra>
